<compile_context>
chip_gen: v7x
topology: tpu7x:2x2x1
jax: 0.10.0
libtpu: 0.0.40
codegen_flags: <defaults>
</compile_context>

<pallas_src>
import jax
import jax.numpy as jnp
from jax.experimental import pallas as pl
from jax.experimental.pallas import tpu as pltpu


# ----------------------------------------------------------------------------
# Kernels
# ----------------------------------------------------------------------------
def _bn_stats_kernel(x_ref, sum_ref, sumsq_ref):
    """Per-channel, per-lane partial sums over one (BN, C, TL) block.

    Accumulators are (1, C, LW) blocks of a (G, C, LW) output: resident across
    the lane-tile grid axis (axis 1) and private to each batch-group block
    (axis 0), so axis 0 can be megacore-parallel.  LW = 128 when lane-dense,
    so each step is plain VPU adds + an unmasked lane-dense accumulator store;
    the final LW->1 cross-lane reduce happens once in the wrapper.
    """
    @pl.when(pl.program_id(1) == 0)
    def _():
        sum_ref[...] = jnp.zeros(sum_ref.shape, sum_ref.dtype)
        sumsq_ref[...] = jnp.zeros(sumsq_ref.shape, sumsq_ref.dtype)

    bn, _, tl = x_ref.shape
    _, c, lw = sum_ref.shape
    chunks = tl // lw
    s = jnp.zeros((c, lw), jnp.float32)
    sq = jnp.zeros((c, lw), jnp.float32)
    for b in range(bn):                      # small static unroll (<= 8)
        for k in range(chunks):              # lane-aligned static slices (<= 32)
            chunk = x_ref[b, :, k * lw:(k + 1) * lw].astype(jnp.float32)
            s = s + chunk
            sq = sq + chunk * chunk
    sum_ref[0] += s
    sumsq_ref[0] += sq


def _bn_apply_kernel(scale_ref, shift_ref, x_ref, o_ref):
    """y = x * scale[c] + shift[c] — fused normalize + affine, lane-dense."""
    x = x_ref[...].astype(jnp.float32)                    # (BN, C, TL)
    scale = scale_ref[...][None]                          # (1, C, 1)
    shift = shift_ref[...][None]
    o_ref[...] = (x * scale + shift).astype(o_ref.dtype)


def _make_bn_fused_train_kernel(eps, inv_count):
    """Single-pass training kernel: whole (N, C, L) tensor resident in VMEM."""
    def kernel(x_ref, w_ref, b_ref, y_ref, mean_ref, var_ref):
        n, c, _ = x_ref.shape
        s = jnp.zeros((c, 1), jnp.float32)
        sq = jnp.zeros((c, 1), jnp.float32)
        for i in range(n):                               # n bounded (<= 32)
            xi = x_ref[i].astype(jnp.float32)            # (C, L)
            s = s + jnp.sum(xi, axis=1, keepdims=True)
            sq = sq + jnp.sum(xi * xi, axis=1, keepdims=True)
        mean = s * inv_count
        var = sq * inv_count - mean * mean
        # TODO(synk): E[x^2]-mean^2 loses precision when |mean| >> std at very
        # large N*H*W; a shifted/Welford accumulation would fix it.
        inv_std = jax.lax.rsqrt(var + eps)
        scale = w_ref[...] * inv_std                     # (C, 1)
        shift = b_ref[...] - mean * scale
        for i in range(n):
            xi = x_ref[i].astype(jnp.float32)
            y_ref[i] = (xi * scale + shift).astype(y_ref.dtype)
        mean_ref[...] = mean
        var_ref[...] = var
    return kernel


# ----------------------------------------------------------------------------
# Tiling / VMEM helpers
# ----------------------------------------------------------------------------
def _vmem_limit(need_bytes):
    """Explicit scoped-VMEM limit: working set + headroom, clamped so it is
    valid on every generation (v7x has only 64 MiB physical VMEM)."""
    return int(min(max(need_bytes + (8 << 20), 32 << 20), 56 << 20))


def _choose_blocks(N, C, L, itemsize, target_bytes):
    """Pick (BN, TL, LW) for the two-pass path.

    TL: lane tile — largest multiple of 128 dividing L within the per-block
        byte budget (capped at 4096 lanes to bound in-kernel unroll), or the
        full extent L when L % 128 != 0.
    BN: batch images folded into one block when C*TL is small, so each grid
        step moves enough bytes to amortize the ~0.35 us per-step overhead.
    LW: lane width of the stats accumulator (128 when lane-dense).
    """
    if L % 128 == 0:
        cap = (target_bytes // max(C * itemsize, 1)) // 128 * 128
        cap = max(128, min(cap, 4096))
        TL = 128
        t = 256
        while t <= L:
            if L % t == 0 and t <= cap:
                TL = t
            t += 128
        LW = 128
    else:
        # TODO(synk): L % 128 != 0 (e.g. 7x7 maps) leaves lane-masked stores;
        # if this layout is hot, a one-time relayout to (C, N*H*W) restores
        # lane density.  Here we at least fold batch to amortize overhead.
        TL = L
        LW = L
    block_bytes = C * TL * itemsize
    BN = 1
    if block_bytes < target_bytes and N > 1:
        want = int(min(8, max(1, target_bytes // max(block_bytes, 1))))
        for d in range(min(N, want), 0, -1):
            if N % d == 0:
                BN = d
                break
    return BN, TL, LW


# ----------------------------------------------------------------------------
# Wrapper
# ----------------------------------------------------------------------------
def batchnorm2d_pallas(x, weight, bias, running_mean, running_var,
                       eps=1e-5, momentum=0.1, training=True,
                       fused_threshold_bytes=(10 << 20),
                       block_target_bytes=(1 << 20)):
    """Forward pass of needle BatchNorm2d.  x: (N, C, H, W) NCHW.

    Returns (y, new_running_mean, new_running_var)."""
    N, C, H, W = x.shape
    L = H * W
    count = N * L
    itemsize = jnp.dtype(x.dtype).itemsize
    x_bytes = N * C * L * itemsize
    x3 = x.reshape(N, C, L)                  # pure view of NCHW — no transpose
    w2 = weight.astype(jnp.float32).reshape(C, 1)
    b2 = bias.astype(jnp.float32).reshape(C, 1)

    # ---- fused single-pass path (training, whole tensor fits in VMEM) ------
    if training and x_bytes <= fused_threshold_bytes and N <= 32:
        fused_need = 4 * x_bytes + 6 * C * 128 * 4
        kernel = _make_bn_fused_train_kernel(float(eps), 1.0 / float(count))
        full_spec = pl.BlockSpec((N, C, L), lambda i: (0, 0, 0))
        cvec_spec = pl.BlockSpec((C, 1), lambda i: (0, 0))
        y3, mean2, var2 = pl.pallas_call(
            kernel,
            out_shape=(jax.ShapeDtypeStruct((N, C, L), x.dtype),
                       jax.ShapeDtypeStruct((C, 1), jnp.float32),
                       jax.ShapeDtypeStruct((C, 1), jnp.float32)),
            grid=(1,),
            in_specs=[full_spec, cvec_spec, cvec_spec],
            out_specs=(full_spec, cvec_spec, cvec_spec),
            compiler_params=pltpu.CompilerParams(
                dimension_semantics=("arbitrary",),
                vmem_limit_bytes=_vmem_limit(fused_need)),
            cost_estimate=pl.CostEstimate(
                flops=5 * N * C * L, transcendentals=C,
                bytes_accessed=2 * N * C * L * itemsize),
        )(x3, w2, b2)
        mean = mean2[:, 0]
        var = var2[:, 0]
        new_rm = (1.0 - momentum) * running_mean + momentum * mean
        new_rv = (1.0 - momentum) * running_var + momentum * var
        return y3.reshape(N, C, H, W), new_rm, new_rv

    # ---- two-pass path ------------------------------------------------------
    BN, TL, LW = _choose_blocks(N, C, L, itemsize, block_target_bytes)
    G = N // BN
    grid = (G, L // TL)
    steps = grid[0] * grid[1]
    block_x_bytes = BN * C * TL * itemsize

    x_spec = pl.BlockSpec((BN, C, TL), lambda g, l: (g, 0, l))
    acc_spec = pl.BlockSpec((1, C, LW), lambda g, l: (g, 0, 0))
    cvec_spec = pl.BlockSpec((C, 1), lambda g, l: (0, 0))

    if training:
        stats_need = 2 * block_x_bytes + 4 * C * max(LW, 128) * 4
        ch_sum, ch_sumsq = pl.pallas_call(
            _bn_stats_kernel,
            out_shape=(jax.ShapeDtypeStruct((G, C, LW), jnp.float32),
                       jax.ShapeDtypeStruct((G, C, LW), jnp.float32)),
            grid=grid,
            in_specs=[x_spec],
            out_specs=(acc_spec, acc_spec),
            compiler_params=pltpu.CompilerParams(
                dimension_semantics=("parallel", "arbitrary"),
                vmem_limit_bytes=_vmem_limit(stats_need)),
            cost_estimate=pl.CostEstimate(
                flops=3 * N * C * L, transcendentals=0,
                bytes_accessed=N * C * L * itemsize),
        )(x3)
        mean = jnp.sum(ch_sum, axis=(0, 2)) / count
        var = jnp.sum(ch_sumsq, axis=(0, 2)) / count - mean * mean
        # TODO(synk): E[x^2]-mean^2 cancellation for very large counts; a
        # shifted/Welford accumulation would improve precision if needed.
        new_rm = (1.0 - momentum) * running_mean + momentum * mean
        new_rv = (1.0 - momentum) * running_var + momentum * var
    else:
        mean = running_mean.astype(jnp.float32)
        var = running_var.astype(jnp.float32)
        new_rm, new_rv = running_mean, running_var

    # Tiny (C,)-sized finalize: fold mean/var/weight/bias into one FMA.
    inv_std = jax.lax.rsqrt(var + eps)
    w32 = weight.astype(jnp.float32)
    scale = (w32 * inv_std).reshape(C, 1)
    shift = (bias.astype(jnp.float32) - mean * w32 * inv_std).reshape(C, 1)

    # Optional 3-deep pipelining on the streamed input when the grid is long
    # enough and the extra buffer fits the VMEM budget.
    bufs_in = 3 if steps >= 4 else 2
    apply_need = (bufs_in + 2) * block_x_bytes + 8 * C * 128 * 4
    if bufs_in == 3 and apply_need > (48 << 20):
        bufs_in = 2
        apply_need = 4 * block_x_bytes + 8 * C * 128 * 4
    if bufs_in == 3:
        x_apply_spec = pl.BlockSpec((BN, C, TL), lambda g, l: (g, 0, l),
                                    pipeline_mode=pl.Buffered(3))
    else:
        x_apply_spec = x_spec

    y3 = pl.pallas_call(
        _bn_apply_kernel,
        out_shape=jax.ShapeDtypeStruct((N, C, L), x.dtype),
        grid=grid,
        in_specs=[cvec_spec, cvec_spec, x_apply_spec],
        out_specs=x_spec,
        compiler_params=pltpu.CompilerParams(
            dimension_semantics=("parallel", "parallel"),
            vmem_limit_bytes=_vmem_limit(apply_need)),
        cost_estimate=pl.CostEstimate(
            flops=2 * N * C * L, transcendentals=0,
            bytes_accessed=2 * N * C * L * itemsize),
    )(scale, shift, x3)

    return y3.reshape(N, C, H, W), new_rm, new_rv


# ----------------------------------------------------------------------------
# Self-test
# ----------------------------------------------------------------------------
if __name__ == "__main__":
    N, C, H, W = 2, 4, 16, 16
    eps, momentum = 1e-5, 0.1

    key = jax.random.PRNGKey(0)
    kx, kw, kb = jax.random.split(key, 3)
    x = jax.random.normal(kx, (N, C, H, W), dtype=jnp.float32)
    weight = 1.0 + 0.5 * jax.random.normal(kw, (C,), dtype=jnp.float32)
    bias = 0.1 * jax.random.normal(kb, (C,), dtype=jnp.float32)
    running_mean = jnp.zeros((C,), jnp.float32)
    running_var = jnp.ones((C,), jnp.float32)

    # Reference, mirroring the module's math exactly (plain XLA).
    xr = jnp.transpose(x, (0, 2, 3, 1)).reshape(N * H * W, C)
    m_ref = xr.sum(0) / xr.shape[0]
    v_ref = ((xr - m_ref) ** 2).sum(0) / xr.shape[0]
    y_ref = (weight * (xr - m_ref) / jnp.sqrt(v_ref + eps) + bias)
    y_ref = y_ref.reshape(N, H, W, C).transpose(0, 3, 1, 2)
    rm_ref = (1 - momentum) * running_mean + momentum * m_ref
    rv_ref = (1 - momentum) * running_var + momentum * v_ref

    # --- 1) training mode, fused single-pass path (tensor fits VMEM) ---
    y, rm, rv = batchnorm2d_pallas(
        x, weight, bias, running_mean, running_var, eps, momentum,
        training=True)
    y = jax.block_until_ready(y)
    assert y.shape == y_ref.shape, (y.shape, y_ref.shape)
    assert jnp.allclose(y, y_ref, rtol=1e-4, atol=1e-4), float(
        jnp.max(jnp.abs(y - y_ref)))
    assert jnp.allclose(rm, rm_ref, rtol=1e-4, atol=1e-4)
    assert jnp.allclose(rv, rv_ref, rtol=1e-4, atol=1e-4)

    # --- 2) training mode, forced two-pass path with a multi-step grid ---
    y2, rm2, rv2 = batchnorm2d_pallas(
        x, weight, bias, running_mean, running_var, eps, momentum,
        training=True, fused_threshold_bytes=0, block_target_bytes=2048)
    y2 = jax.block_until_ready(y2)
    assert jnp.allclose(y2, y_ref, rtol=1e-4, atol=1e-4), float(
        jnp.max(jnp.abs(y2 - y_ref)))
    assert jnp.allclose(rm2, rm_ref, rtol=1e-4, atol=1e-4)
    assert jnp.allclose(rv2, rv_ref, rtol=1e-4, atol=1e-4)

    # --- 3) eval mode (running statistics) ---
    y_eval, _, _ = batchnorm2d_pallas(
        x, weight, bias, running_mean, running_var, eps, momentum,
        training=False)
    y_eval = jax.block_until_ready(y_eval)
    y_eval_ref = (weight * (xr - running_mean)
                  / jnp.sqrt(running_var + eps) + bias)
    y_eval_ref = y_eval_ref.reshape(N, H, W, C).transpose(0, 3, 1, 2)
    assert jnp.allclose(y_eval, y_eval_ref, rtol=1e-4, atol=1e-4), float(
        jnp.max(jnp.abs(y_eval - y_eval_ref)))

    print("KERNEL_OK")
</pallas_src>

<mosaic_0001>
module attributes {stable_mosaic.version = 11 : i64} {
  func.func @kernel(%arg0: i32, %arg1: memref<2x4x256xf32, #tpu.memory_space<vmem>>, %arg2: memref<4x1xf32, #tpu.memory_space<vmem>>, %arg3: memref<4x1xf32, #tpu.memory_space<vmem>>, %arg4: memref<2x4x256xf32, #tpu.memory_space<vmem>>, %arg5: memref<4x1xf32, #tpu.memory_space<vmem>>, %arg6: memref<4x1xf32, #tpu.memory_space<vmem>>) attributes {dimension_semantics = [#tpu.dimension_semantics<arbitrary>], iteration_bounds = array<i64: 1>, scalar_prefetch = 0 : i64, scratch_operands = 0 : i64, tpu.core_type = #tpu.core_type<tc>, window_params = [{pipeline_mode = #tpu.pipeline_mode<synchronous>, transform_indices = @transform_0, window_bounds = array<i64: 2, 4, 256>}, {pipeline_mode = #tpu.pipeline_mode<synchronous>, transform_indices = @transform_1, window_bounds = array<i64: 4, 1>}, {pipeline_mode = #tpu.pipeline_mode<synchronous>, transform_indices = @transform_2, window_bounds = array<i64: 4, 1>}, {pipeline_mode = #tpu.pipeline_mode<synchronous>, transform_indices = @transform_3, window_bounds = array<i64: 2, 4, 256>}, {pipeline_mode = #tpu.pipeline_mode<synchronous>, transform_indices = @transform_4, window_bounds = array<i64: 4, 1>}, {pipeline_mode = #tpu.pipeline_mode<synchronous>, transform_indices = @transform_5, window_bounds = array<i64: 4, 1>}]} {
    %cst = arith.constant 0.000000e+00 : f32
    %0 = vector.broadcast %cst : f32 to vector<4x1xf32>
    %cst_0 = arith.constant 0.000000e+00 : f32
    %1 = vector.broadcast %cst_0 : f32 to vector<4x1xf32>
    %c0 = arith.constant 0 : index
    %c0_1 = arith.constant 0 : index
    %c0_2 = arith.constant 0 : index
    %2 = vector.load %arg1[%c0, %c0_1, %c0_2] : memref<2x4x256xf32, #tpu.memory_space<vmem>>, vector<1x4x256xf32>
    %3 = vector.shape_cast %2 : vector<1x4x256xf32> to vector<4x256xf32>
    %cst_3 = arith.constant dense<0.000000e+00> : vector<4xf32>
    %4 = vector.multi_reduction <add>, %3, %cst_3 [1] : vector<4x256xf32> to vector<4xf32>
    %5 = vector.shape_cast %4 : vector<4xf32> to vector<4x1xf32>
    %6 = arith.addf %0, %5 : vector<4x1xf32>
    %7 = arith.mulf %3, %3 : vector<4x256xf32>
    %cst_4 = arith.constant dense<0.000000e+00> : vector<4xf32>
    %8 = vector.multi_reduction <add>, %7, %cst_4 [1] : vector<4x256xf32> to vector<4xf32>
    %9 = vector.shape_cast %8 : vector<4xf32> to vector<4x1xf32>
    %10 = arith.addf %1, %9 : vector<4x1xf32>
    %c1 = arith.constant 1 : index
    %c0_5 = arith.constant 0 : index
    %c0_6 = arith.constant 0 : index
    %11 = vector.load %arg1[%c1, %c0_5, %c0_6] : memref<2x4x256xf32, #tpu.memory_space<vmem>>, vector<1x4x256xf32>
    %12 = vector.shape_cast %11 : vector<1x4x256xf32> to vector<4x256xf32>
    %cst_7 = arith.constant dense<0.000000e+00> : vector<4xf32>
    %13 = vector.multi_reduction <add>, %12, %cst_7 [1] : vector<4x256xf32> to vector<4xf32>
    %14 = vector.shape_cast %13 : vector<4xf32> to vector<4x1xf32>
    %15 = arith.addf %6, %14 : vector<4x1xf32>
    %16 = arith.mulf %12, %12 : vector<4x256xf32>
    %cst_8 = arith.constant dense<0.000000e+00> : vector<4xf32>
    %17 = vector.multi_reduction <add>, %16, %cst_8 [1] : vector<4x256xf32> to vector<4xf32>
    %18 = vector.shape_cast %17 : vector<4xf32> to vector<4x1xf32>
    %19 = arith.addf %10, %18 : vector<4x1xf32>
    %cst_9 = arith.constant 0.001953125 : f32
    %20 = vector.broadcast %cst_9 : f32 to vector<4x1xf32>
    %21 = arith.mulf %15, %20 : vector<4x1xf32>
    %cst_10 = arith.constant 0.001953125 : f32
    %22 = vector.broadcast %cst_10 : f32 to vector<4x1xf32>
    %23 = arith.mulf %19, %22 : vector<4x1xf32>
    %24 = arith.mulf %21, %21 : vector<4x1xf32>
    %25 = arith.subf %23, %24 : vector<4x1xf32>
    %cst_11 = arith.constant 9.99999974E-6 : f32
    %26 = vector.broadcast %cst_11 : f32 to vector<4x1xf32>
    %27 = arith.addf %25, %26 : vector<4x1xf32>
    %28 = math.rsqrt %27 : vector<4x1xf32>
    %c0_12 = arith.constant 0 : index
    %c0_13 = arith.constant 0 : index
    %29 = vector.load %arg2[%c0_12, %c0_13] : memref<4x1xf32, #tpu.memory_space<vmem>>, vector<4x1xf32>
    %30 = arith.mulf %29, %28 : vector<4x1xf32>
    %c0_14 = arith.constant 0 : index
    %c0_15 = arith.constant 0 : index
    %31 = vector.load %arg3[%c0_14, %c0_15] : memref<4x1xf32, #tpu.memory_space<vmem>>, vector<4x1xf32>
    %32 = arith.mulf %21, %30 : vector<4x1xf32>
    %33 = arith.subf %31, %32 : vector<4x1xf32>
    %c0_16 = arith.constant 0 : index
    %c0_17 = arith.constant 0 : index
    %c0_18 = arith.constant 0 : index
    %34 = vector.load %arg1[%c0_16, %c0_17, %c0_18] : memref<2x4x256xf32, #tpu.memory_space<vmem>>, vector<1x4x256xf32>
    %35 = vector.shape_cast %34 : vector<1x4x256xf32> to vector<4x256xf32>
    %36 = vector.broadcast %30 : vector<4x1xf32> to vector<4x256xf32>
    %37 = arith.mulf %35, %36 : vector<4x256xf32>
    %38 = vector.broadcast %33 : vector<4x1xf32> to vector<4x256xf32>
    %39 = arith.addf %37, %38 : vector<4x256xf32>
    %c0_19 = arith.constant 0 : index
    %c0_20 = arith.constant 0 : index
    %c0_21 = arith.constant 0 : index
    %40 = vector.load %arg4[%c0_19, %c0_20, %c0_21] : memref<2x4x256xf32, #tpu.memory_space<vmem>>, vector<1x4x256xf32>
    %41 = vector.shape_cast %40 : vector<1x4x256xf32> to vector<4x256xf32>
    %42 = vector.shape_cast %39 : vector<4x256xf32> to vector<1x4x256xf32>
    tpu.vector_store %arg4[%c0_19, %c0_20, %c0_21], %42 {strides = array<i32>} : memref<2x4x256xf32, #tpu.memory_space<vmem>>, vector<1x4x256xf32>,
    %c1_22 = arith.constant 1 : index
    %c0_23 = arith.constant 0 : index
    %c0_24 = arith.constant 0 : index
    %43 = vector.load %arg1[%c1_22, %c0_23, %c0_24] : memref<2x4x256xf32, #tpu.memory_space<vmem>>, vector<1x4x256xf32>
    %44 = vector.shape_cast %43 : vector<1x4x256xf32> to vector<4x256xf32>
    %45 = vector.broadcast %30 : vector<4x1xf32> to vector<4x256xf32>
    %46 = arith.mulf %44, %45 : vector<4x256xf32>
    %47 = vector.broadcast %33 : vector<4x1xf32> to vector<4x256xf32>
    %48 = arith.addf %46, %47 : vector<4x256xf32>
    %c1_25 = arith.constant 1 : index
    %c0_26 = arith.constant 0 : index
    %c0_27 = arith.constant 0 : index
    %49 = vector.load %arg4[%c1_25, %c0_26, %c0_27] : memref<2x4x256xf32, #tpu.memory_space<vmem>>, vector<1x4x256xf32>
    %50 = vector.shape_cast %49 : vector<1x4x256xf32> to vector<4x256xf32>
    %51 = vector.shape_cast %48 : vector<4x256xf32> to vector<1x4x256xf32>
    tpu.vector_store %arg4[%c1_25, %c0_26, %c0_27], %51 {strides = array<i32>} : memref<2x4x256xf32, #tpu.memory_space<vmem>>, vector<1x4x256xf32>,
    %c0_28 = arith.constant 0 : index
    %c0_29 = arith.constant 0 : index
    %52 = vector.load %arg5[%c0_28, %c0_29] : memref<4x1xf32, #tpu.memory_space<vmem>>, vector<4x1xf32>
    tpu.vector_store %arg5[%c0_28, %c0_29], %21 {strides = array<i32>} : memref<4x1xf32, #tpu.memory_space<vmem>>, vector<4x1xf32>,
    %c0_30 = arith.constant 0 : index
    %c0_31 = arith.constant 0 : index
    %53 = vector.load %arg6[%c0_30, %c0_31] : memref<4x1xf32, #tpu.memory_space<vmem>>, vector<4x1xf32>
    tpu.vector_store %arg6[%c0_30, %c0_31], %25 {strides = array<i32>} : memref<4x1xf32, #tpu.memory_space<vmem>>, vector<4x1xf32>,
    return
  }
  func.func @transform_0(%arg0: i32) -> (i32, i32, i32) {
    %c0_i32 = arith.constant 0 : i32
    %c0_i32_0 = arith.constant 0 : i32
    %c0_i32_1 = arith.constant 0 : i32
    %c0_i32_2 = arith.constant 0 : i32
    return %c0_i32, %c0_i32_0, %c0_i32_1 : i32, i32, i32
  }
  func.func @transform_1(%arg0: i32) -> (i32, i32) {
    %c0_i32 = arith.constant 0 : i32
    %c0_i32_0 = arith.constant 0 : i32
    %c0_i32_1 = arith.constant 0 : i32
    return %c0_i32, %c0_i32_0 : i32, i32
  }
  func.func @transform_2(%arg0: i32) -> (i32, i32) {
    %c0_i32 = arith.constant 0 : i32
    %c0_i32_0 = arith.constant 0 : i32
    %c0_i32_1 = arith.constant 0 : i32
    return %c0_i32, %c0_i32_0 : i32, i32
  }
  func.func @transform_3(%arg0: i32) -> (i32, i32, i32) {
    %c0_i32 = arith.constant 0 : i32
    %c0_i32_0 = arith.constant 0 : i32
    %c0_i32_1 = arith.constant 0 : i32
    %c0_i32_2 = arith.constant 0 : i32
    return %c0_i32, %c0_i32_0, %c0_i32_1 : i32, i32, i32
  }
  func.func @transform_4(%arg0: i32) -> (i32, i32) {
    %c0_i32 = arith.constant 0 : i32
    %c0_i32_0 = arith.constant 0 : i32
    %c0_i32_1 = arith.constant 0 : i32
    return %c0_i32, %c0_i32_0 : i32, i32
  }
  func.func @transform_5(%arg0: i32) -> (i32, i32) {
    %c0_i32 = arith.constant 0 : i32
    %c0_i32_0 = arith.constant 0 : i32
    %c0_i32_1 = arith.constant 0 : i32
    return %c0_i32, %c0_i32_0 : i32, i32
  }
}

</mosaic_0001>

<bundles_post_ra>
// kernel: tpu_custom_call.1
= control target key start
LH: loop header
LB: loop body
LE: loop exit
PB: predicated region body
PF: predicated region fallthrough
CT: control target
= control target key end

     0   :  { %11 = vsyncpa [#allocation3], 0  ;;  %s291_s0 = inlined_call_operand.hbm [shape: f32[2,4,256], index: 0, kind: input, shape index: {}]   ;;  %s292_s1 = inlined_call_operand.vmem [shape: f32[4,1], index: 1, kind: input, shape index: {}]   ;;  %s293_s2 = inlined_call_operand.vmem [shape: f32[4,1], index: 2, kind: input, shape index: {}]   ;;  %s294_s3 = inlined_call_operand.hbm [shape: f32[2,4,256], index: 3, kind: output, shape index: {0}]   ;;  %s295_s4 = inlined_call_operand.vmem [shape: f32[4,1], index: 4, kind: output, shape index: {1}]   ;;  %s296_s5 = inlined_call_operand.vmem [shape: f32[4,1], index: 5, kind: output, shape index: {2}]  }
   0x1   :  { %12 = vsyncpa [#allocation4], 0  ;;  %s205_s18 = smov [#allocation2]   ;;  %s157_s22 = scalar_lea.hbm %s291_s0, 256 }
   0x2   :  { %s18_s19 = sshll.u32 %s205_s18, 4  ;;  %p158_p0 = scmp.ne.s32.totalorder %s291_s0, %s157_s22  ;;  %s19_s19 = int_to_ptr.vmem [resolvable:$true] %s18_s19 }
   0x3   :  { %p161_p1 = scmp.lt.u32.totalorder %s157_s22, %s291_s0 }
   0x5   :  { %p163_p2 = pnand %p161_p1, %p158_p0 }
   0x7   :  { %166 = shalt.err (!%p163_p2)
}
   0x8   :  { %s167_s27 = scalar_lea.vmem %s19_s19, 256  ;;  %p172_p4 = scmp.lt.s32.totalorder %s19_s19, %s19_s19 }
   0x9   :  { %p168_p3 = scmp.ne.s32.totalorder %s19_s19, %s167_s27  ;;  %p173_p5 = scmp.lt.s32.totalorder %s167_s27, %s167_s27 }
   0xb   :  { %p174_p6 = por %p173_p5, %p172_p4 }
   0xd   :  { %p175_p7 = pnand %p174_p6, %p168_p3 }
   0xf   :  { %178 = shalt.err (!%p175_p7)
}
  0x10   :  { %s206_s28 = smov 128   ;;  %s207_s29 = smov 8  }
  0x11   :  { %24 = dma.hbm_to_vmem [thread:$0]  %s291_s0, 256, %s19_s19, [#allocation3], %s206_s28, %s206_s28, %s207_s29  }
  0x12   :  { %201 = dma.done.wait [#allocation3], 256  }
  0x13   :  { %202 = vsyncadd [#allocation3], 4294967040  ;;  %vm36_vm0 = vcmask 1043456   ;;  %v32_v0 = vld [vmem:[#allocation2] sm:$0xff]  ;;  %v54_v1 = vld [vmem:[#allocation2 + $0x8] sm:$0xff]  ;;  %v208_v20 = vmov 0   ;;  %v92_v40 = vlaneseq }
  0x14   :  { %v34_v2 = vcombine.high %v32_v0, %v32_v0  ;;  %v37_v3 = vsel %vm36_vm0, %v32_v0, 0.0  ;;  %v43_v4 = vmul.f32 %v32_v0, %v32_v0  ;;  %v56_v5 = vcombine.high %v54_v1, %v54_v1  ;;  %151 = vset.pattern.permute.xlu0 %v208_v20  ;;  %152 = vset.pattern.permute.xlu1 %v208_v20  ;;  %v80_v32 = vld [vmem:[%s292_s1] sm:$0xf]  ;;  %s210_s1 = smov [#allocation5]  }
  0x15   :  { %v58_v6 = vsel %vm36_vm0, %v54_v1, 0.0  ;;  %v64_v7 = vmul.f32 %v54_v1, %v54_v1  ;;  %vm117_vm1 = vcmask 3072   ;;  %v82_v35 = vld [vmem:[%s293_s2] sm:$0xf]  ;;  %v209_v38 = vmov 839922192  }
  0x16   :  { %v38_v8 = vsel %vm36_vm0, %v34_v2, 0.0  ;;  %v45_v9 = vcombine.high %v43_v4, %v43_v4  ;;  %v47_v10 = vsel %vm36_vm0, %v43_v4, 0.0  ;;  %v59_v11 = vsel %vm36_vm0, %v56_v5, 0.0 }
  0x17   :  { %v39_v12 = vadd.f32 %v38_v8, %v37_v3  ;;  %v66_v13 = vcombine.high %v64_v7, %v64_v7  ;;  %v68_v15 = vsel %vm36_vm0, %v64_v7, 0.0  ;;  %v60_v17 = vadd.f32 %v59_v11, %v58_v6 }
  0x18   :  { %v48_v14 = vsel %vm36_vm0, %v45_v9, 0.0  ;;  %v90_v39 = vunpack.c.l.s4 %v209_v38  ;;  %v93_v42 = vshrl.u32 %v92_v40, 7 }
  0x19   :  { %40 = vadd.xlane.f32.xlu0 %v39_v12  ;;  %v49_v16 = vadd.f32 %v48_v14, %v47_v10  ;;  %v69_v18 = vsel %vm36_vm0, %v66_v13, 0.0 }
  0x1a   :  { %v70_v19 = vadd.f32 %v69_v18, %v68_v15  ;;  %v91_v41 = vunpack.c.0.s8 %v90_v39 }
  0x1b   :  { %50 = vadd.xlane.f32.xlu1 %v49_v16 }
  0x1c   :  { %v94_v43 = vsub.s32 %v91_v41, %v93_v42 }
  0x1d   :  { %61 = vadd.xlane.f32.xlu0 %v60_v17 }
  0x1f   :  { %71 = vadd.xlane.f32.xlu1 %v70_v19 }
  0xa6   :  { %v41_v21 = vpop.xlane.xlu0 %40 }
  0xa8   :  { %v51_v22 = vpop.xlane.xlu1 %50 }
  0xaa   :  { %v62_v23 = vpop.xlane.xlu0 %61 }
  0xab   :  { %v63_v24 = vadd.f32 %v62_v23, %v41_v21 }
  0xac   :  { %v72_v25 = vpop.xlane.xlu1 %71 }
  0xad   :  { %v74_v26 = vmul.f32 0.001953125, %v63_v24  ;;  %v73_v27 = vadd.f32 %v72_v25, %v51_v22 }
  0xaf   :  { %118 = vst.msk [vmem:[%s295_s4] sm:$0xf] %vm117_vm1, %v74_v26  ;;  %v75_v28 = vmul.f32 0.001953125, %v73_v27  ;;  %v76_v29 = vmul.f32 %v74_v26, %v74_v26  ;;  %s125_s4 = sshll.u32 %s210_s1, 4  ;;  %s126_s4 = int_to_ptr.vmem [resolvable:$true] %s125_s4 }
  0xb0   :  { %s179_s2 = scalar_lea.vmem %s126_s4, 256  ;;  %p184_p9 = scmp.lt.s32.totalorder %s126_s4, %s126_s4 }
  0xb1   :  { %v77_v30 = vsub.f32 %v75_v28, %v76_v29  ;;  %p180_p8 = scmp.ne.s32.totalorder %s126_s4, %s179_s2  ;;  %p185_p10 = scmp.lt.s32.totalorder %s179_s2, %s179_s2 }
  0xb3   :  { %v78_v31 = vadd.f32 1e-05, %v77_v30  ;;  %119 = vst.msk [vmem:[%s296_s5] sm:$0xf] %vm117_vm1, %v77_v30  ;;  %p186_p11 = por %p185_p10, %p184_p9 }
  0xb5   :  { %155 = vrsqrt.f32 %v78_v31  ;;  %p187_p12 = pnand %p186_p11, %p180_p8 }
  0xbf   :  { %v156_v33 = vpop.eup %155 }
  0xc0   :  { %v81_v34 = vmul.f32 %v156_v33, %v80_v32 }
  0xc2   :  { %87 = vperm.xlu0 %151, %v81_v34   ;;  %v83_v36 = vmul.f32 %v81_v34, %v74_v26 }
  0xc4   :  { %v84_v37 = vsub.f32 %v82_v35, %v83_v36 }
  0xc6   :  { %100 = vperm.xlu1 %152, %v84_v37  }
 0x141   :  { %v88_v44 = vpop.permute.xlu0 %87 }
 0x142   :  { %v95_v45 = vrot.slane %v88_v44, %v94_v43 }
 0x144   :  { %v97_v47 = vmul.f32 %v95_v45, %v32_v0  ;;  %v113_v48 = vmul.f32 %v95_v45, %v54_v1 }
 0x145   :  { %v101_v46 = vpop.permute.xlu1 %100 }
 0x146   :  { %v108_v49 = vrot.slane %v101_v46, %v94_v43 }
 0x148   :  { %v110_v50 = vadd.f32 %v108_v49, %v97_v47  ;;  %v114_v51 = vadd.f32 %v113_v48, %v108_v49 }
 0x14a   :  { %111 = vst [vmem:[#allocation5] sm:$0xff] %v110_v50  ;;  %116 = vst [vmem:[#allocation5 + $0x8] sm:$0xff] %v114_v51 }
 0x14b   :  { %190 = shalt.err (!%p187_p12)
}
 0x14c   :  { %s191_s15 = scalar_lea.hbm %s294_s3, 256 }
 0x14d   :  { %p192_p13 = scmp.ne.s32.totalorder %s294_s3, %s191_s15  ;;  %p195_p0 = scmp.lt.u32.totalorder %s191_s15, %s294_s3 }
 0x14f   :  { %p197_p1 = pnand %p195_p0, %p192_p13 }
 0x151   :  { %200 = shalt.err (!%p197_p1)
}
 0x152   :  { %131 = dma.vmem_to_hbm [thread:$0]  %s126_s4, 256, %s294_s3, [#allocation4], %s206_s28, %s206_s28, %s207_s29  }
 0x153   :  { %203 = dma.done.wait [#allocation4], 256  }
 0x154   :  { %204 = vsyncadd [#allocation4], 4294967040 }
 0x155   :  { %143 = vsyncpa [#allocation3], 1 }
 0x156   :  { %144 = vsyncpa [#allocation4], 1 }

</bundles_post_ra>
